<compile_context>
chip_gen: v7x
topology: tpu7x:2x2x1
jax: 0.10.0
libtpu: 0.0.40
codegen_flags: <defaults>
</compile_context>

<pallas_src>
import functools

import jax
import jax.numpy as jnp
import numpy as np
from jax.experimental import pallas as pl
from jax.experimental.pallas import tpu as pltpu

TWO_48_MINUS_1 = float(2 ** 48 - 1)
INV_TWO_48 = 1.0 / TWO_48_MINUS_1


def _round_up(n: int, m: int) -> int:
    return ((n + m - 1) // m) * m


def _round8(n: int) -> int:
    return _round_up(n, 8)


def _pad_to(m, rows, cols):
    m = jnp.asarray(m, jnp.float32)
    return jnp.pad(m, ((0, rows - m.shape[0]), (0, cols - m.shape[1])))


# ----------------------------------------------------------------------------
# Weight packing (runs once per model in plain JAX).
#   emb : [Re, W]      shared id_mlp + edge_mlp(first layer) weights
#   conv: [4, Rp, C]   per-(graph, layer) conv weights; edge_mlp's second
#                      Linear is pre-composed into each conv's edge-lin.
# All column paddings are ZERO so junk feature columns stay zero throughout
# the kernel (no in-kernel slicing by node_emb vs hidden).
# ----------------------------------------------------------------------------
def pack_model_params(params, node_emb, edge_emb, hidden):
    C = max(node_emb, hidden)
    Ce = edge_emb
    W = max(C, Ce)
    r8c, r8ce = _round8(C), _round8(Ce)

    id_w1, id_b1, id_w2, id_b2 = params['id_mlp']
    ew1, eb1, ew2, eb2 = params['edge_mlp']

    emb = jnp.concatenate([
        _pad_to(ew1, 8, W), _pad_to(eb1, 8, W),
        _pad_to(id_w1, 8, W), _pad_to(id_b1, 8, W),
        _pad_to(id_w2, r8c, W), _pad_to(id_b2, 8, W)], axis=0)

    def conv_page(prefix, layer):
        lw, lb = params[f'{prefix}_conv{layer}_lin']
        nw1, nb1, nw2, nb2 = params[f'{prefix}_conv{layer}_nn']
        cw = jnp.asarray(ew2, jnp.float32) @ jnp.asarray(lw, jnp.float32)
        cb = jnp.asarray(eb2, jnp.float32) @ jnp.asarray(lw, jnp.float32) + lb
        return jnp.concatenate([
            _pad_to(cw, r8ce, C), _pad_to(cb, 8, C),
            _pad_to(nw1, r8c, C), _pad_to(nb1, 8, C),
            _pad_to(nw2, r8c, C), _pad_to(nb2, 8, C)], axis=0)

    conv = jnp.stack([conv_page('state', 1), conv_page('state', 2),
                      conv_page('goal', 1), conv_page('goal', 2)])
    return {'emb': emb, 'conv': conv, 'classifier': params['classifier'],
            'dims': (node_emb, edge_emb, hidden)}


# ----------------------------------------------------------------------------
# The fused encoder kernel. Grid = (graph, layer, edge_tile).
# ----------------------------------------------------------------------------
def _encode_kernel(nid_ref, ea_ref, src_ref, dst_ref, pool_ref,
                   embw_ref, convw_ref, out_ref,
                   x_sc, aggr_sc, xbf_sc, *, C, Ce):
    f32, bf16 = jnp.float32, jnp.bfloat16
    l = pl.program_id(1)
    t = pl.program_id(2)
    last_l = pl.num_programs(1) - 1
    last_t = pl.num_programs(2) - 1
    r8c, r8ce = _round8(C), _round8(Ce)

    # Static offsets into the packed weight pages (all 8-row aligned).
    EW1, EB1, IDW1, IDB1, IDW2 = 0, 8, 16, 24, 32
    IDB2 = 32 + r8c
    CW, CB = 0, r8ce
    NW1 = r8ce + 8
    NB1 = NW1 + r8c
    NW2 = NB1 + 8
    NB2 = NW2 + r8c

    # ---- node-id embedding MLP (once per graph) -----------------------------
    @pl.when((l == 0) & (t == 0))
    def _init_nodes():
        ids = jnp.clip(nid_ref[...] * INV_TWO_48, 0.0, 1.0)            # [N, 1]
        h = jnp.maximum(ids * embw_ref[IDW1:IDW1 + 1, :C]
                        + embw_ref[IDB1:IDB1 + 1, :C], 0.0)            # VPU broadcast (K=1)
        x0 = jnp.dot(h.astype(bf16),
                     embw_ref[IDW2:IDW2 + C, :C].astype(bf16),
                     preferred_element_type=f32) + embw_ref[IDB2:IDB2 + 1, :C]
        x_sc[...] = x0

    # ---- layer start: reset scatter accumulator, snapshot x in bf16 ---------
    @pl.when(t == 0)
    def _init_layer():
        aggr_sc[...] = jnp.zeros_like(aggr_sc)
        xbf_sc[...] = x_sc[...].astype(bf16)

    # ---- per-edge-tile: edge embedding + gather + message + scatter-add -----
    e_pre = jnp.maximum(ea_ref[...] * embw_ref[EW1:EW1 + 1, :Ce]
                        + embw_ref[EB1:EB1 + 1, :Ce], 0.0)             # [TE, Ce]
    e_lin = jnp.dot(e_pre.astype(bf16), convw_ref[CW:CW + Ce, :].astype(bf16),
                    preferred_element_type=f32) + convw_ref[CB:CB + 1, :]
    x_j = jnp.dot(src_ref[...], xbf_sc[...],                           # gather (bf16 MXU)
                  preferred_element_type=f32)                          # [TE, C]
    msg = jnp.maximum(x_j + e_lin, 0.0)
    aggr_sc[...] += jax.lax.dot_general(                               # scatter-add = D^T @ msg
        dst_ref[...], msg.astype(bf16), (((0,), (0,)), ((), ())),
        preferred_element_type=f32)

    # ---- layer end: GINE update nn + outer ReLU -> new node features --------
    @pl.when(t == last_t)
    def _finalize_layer():
        h = aggr_sc[...] + x_sc[...]                                   # (1 + eps) * x, eps = 0
        h1 = jnp.maximum(
            jnp.dot(h.astype(bf16), convw_ref[NW1:NW1 + C, :].astype(bf16),
                    preferred_element_type=f32) + convw_ref[NB1:NB1 + 1, :], 0.0)
        h2 = jnp.dot(h1.astype(bf16), convw_ref[NW2:NW2 + C, :].astype(bf16),
                     preferred_element_type=f32) + convw_ref[NB2:NB2 + 1, :]
        x_sc[...] = jnp.maximum(h2, 0.0)

    # ---- last layer end: global mean pool ------------------------------------
    @pl.when((t == last_t) & (l == last_l))
    def _pool():
        out_ref[...] = jnp.dot(pool_ref[...], x_sc[...],
                               preferred_element_type=f32)             # [B, C]


def _choose_edge_tile(n_edges, n_pad, budget_bytes=16 * 2 ** 20):
    """Pick TE so the double-buffered src/dst one-hot bf16 blocks fit the budget.
    Granularity 16 rows (bf16 sublane packing)."""
    bytes_per_edge_row = 2 * 2 * n_pad * 2        # 2 matrices x 2 buffers x bf16
    te = max(16, budget_bytes // max(bytes_per_edge_row, 1))
    te = (te // 16) * 16
    return int(max(16, min(te, _round_up(n_edges, 16))))


# ----------------------------------------------------------------------------
# Forward wrapper: pads/stacks graph data, launches the fused encoder kernel,
# then runs the tiny classifier head in plain JAX (it is negligible and the
# two pooled encodes may live on different TensorCores).
# ----------------------------------------------------------------------------
def forward(packed, batch_inputs, edge_tile=None):
    node_emb, edge_emb, hidden = packed['dims']
    C = max(node_emb, hidden)
    Ce = edge_emb
    sg, gg = batch_inputs['state_graph'], batch_inputs['goal_graph']
    depth = batch_inputs['depth'].astype(jnp.float32).reshape(-1, 1)
    B = depth.shape[0]

    n_pad = max(_round8(sg['G'].shape[1]), _round8(gg['G'].shape[1]))
    e_max = max(sg['G'].shape[0], gg['G'].shape[0])
    te = int(edge_tile) if edge_tile is not None else _choose_edge_tile(e_max, n_pad)
    e_pad = _round_up(e_max, te)
    n_tiles = e_pad // te

    def prep(gr):
        return (_pad_to(gr['node_names'], n_pad, 1),
                _pad_to(gr['edge_attr'], e_pad, 1),
                _pad_to(gr['G'], e_pad, n_pad).astype(jnp.bfloat16),
                _pad_to(gr['D'], e_pad, n_pad).astype(jnp.bfloat16),
                _pad_to(gr['P'], B, n_pad))

    s_in, g_in = prep(sg), prep(gg)
    nid = jnp.stack([s_in[0], g_in[0]])     # [2, N_pad, 1]  f32
    ea = jnp.stack([s_in[1], g_in[1]])      # [2, E_pad, 1]  f32
    gmat = jnp.stack([s_in[2], g_in[2]])    # [2, E_pad, N_pad] bf16 src one-hot
    dmat = jnp.stack([s_in[3], g_in[3]])    # [2, E_pad, N_pad] bf16 dst one-hot
    pmat = jnp.stack([s_in[4], g_in[4]])    # [2, B, N_pad]  f32 mean-pool

    emb_w, conv_w = packed['emb'], packed['conv']
    re_rows, w_cols = emb_w.shape
    rp_rows = conv_w.shape[1]

    # VMEM estimate: streamed tiles (x2 buffers) + resident blocks + scratch.
    est = (2 * 2 * te * n_pad * 2 + 2 * te * 4
           + 2 * (n_pad + B * n_pad + B * C) * 4
           + (re_rows * w_cols + 2 * rp_rows * C) * 4
           + 2 * n_pad * C * 4 + n_pad * C * 2)
    # Conservative cross-generation cap (v7x has 64 MiB physical per core;
    # v5e/v6e could go higher).
    vmem_limit = int(min(max(2 * est, 16 * 2 ** 20), 64 * 2 ** 20))

    flops = 2 * 2 * (2 * 2 * e_pad * n_pad * C       # gather + scatter
                     + 2 * e_pad * Ce * C            # composed edge-lin
                     + 2 * 2 * n_pad * C * C)        # conv nn MLP
    flops += 2 * (2 * n_pad * C * C + 2 * B * n_pad * C)   # id_mlp + pool
    bytes_accessed = int(2 * (gmat.size + dmat.size) * 2
                         + (nid.size + ea.size + pmat.size) * 4
                         + (emb_w.size + conv_w.size) * 4 + 2 * B * C * 4)

    kern = functools.partial(_encode_kernel, C=C, Ce=Ce)
    pooled = pl.pallas_call(
        kern,
        out_shape=jax.ShapeDtypeStruct((2, B, C), jnp.float32),
        grid_spec=pltpu.PrefetchScalarGridSpec(
            num_scalar_prefetch=0,
            grid=(2, 2, n_tiles),
            in_specs=[
                pl.BlockSpec((None, n_pad, 1), lambda g, l, t: (g, 0, 0)),    # node ids
                pl.BlockSpec((None, te, 1), lambda g, l, t: (g, t, 0)),       # edge attr tile
                pl.BlockSpec((None, te, n_pad), lambda g, l, t: (g, t, 0)),   # src one-hot tile
                pl.BlockSpec((None, te, n_pad), lambda g, l, t: (g, t, 0)),   # dst one-hot tile
                pl.BlockSpec((None, B, n_pad), lambda g, l, t: (g, 0, 0)),    # mean-pool matrix
                pl.BlockSpec((re_rows, w_cols), lambda g, l, t: (0, 0)),      # shared emb weights
                pl.BlockSpec((None, rp_rows, C), lambda g, l, t: (g * 2 + l, 0, 0)),  # per-(g,l) conv w
            ],
            out_specs=pl.BlockSpec((None, B, C), lambda g, l, t: (g, 0, 0)),
            scratch_shapes=[pltpu.VMEM((n_pad, C), jnp.float32),    # node features x
                            pltpu.VMEM((n_pad, C), jnp.float32),    # scatter accumulator
                            pltpu.VMEM((n_pad, C), jnp.bfloat16)],  # bf16 snapshot of x
        ),
        compiler_params=pltpu.CompilerParams(
            dimension_semantics=("parallel", "arbitrary", "arbitrary"),
            vmem_limit_bytes=vmem_limit),
        cost_estimate=pl.CostEstimate(flops=int(flops), transcendentals=0,
                                      bytes_accessed=int(bytes_accessed)),
    )(nid, ea, gmat, dmat, pmat, emb_w, conv_w)

    s = pooled[0, :, :hidden]
    g = pooled[1, :, :hidden]
    cw1, cb1, cw2, cb2 = packed['classifier']
    z = jnp.concatenate([s, g, depth], axis=1)
    z = jnp.maximum(z @ cw1 + cb1, 0.0)
    return (z @ cw2 + cb2)[:, 0]


# ----------------------------------------------------------------------------
# Parameters & graph preprocessing (plain-JAX glue).
# ----------------------------------------------------------------------------
def init_params(key, hidden_dim=32, node_emb_dim=32, edge_emb_dim=32):
    def linear(k, fan_in, fan_out):
        kw, kb = jax.random.split(k)
        lim = 1.0 / np.sqrt(fan_in)
        w = jax.random.uniform(kw, (fan_in, fan_out), jnp.float32, -lim, lim)
        b = jax.random.uniform(kb, (1, fan_out), jnp.float32, -lim, lim)
        return w, b

    keys = jax.random.split(key, 32)
    ki = iter(keys)
    p = {}
    p['id_mlp'] = linear(next(ki), 1, node_emb_dim) + linear(next(ki), node_emb_dim, node_emb_dim)
    p['edge_mlp'] = linear(next(ki), 1, edge_emb_dim) + linear(next(ki), edge_emb_dim, edge_emb_dim)
    for pref in ('state', 'goal'):
        p[f'{pref}_conv1_lin'] = linear(next(ki), edge_emb_dim, node_emb_dim)
        p[f'{pref}_conv1_nn'] = linear(next(ki), node_emb_dim, hidden_dim) + \
                                linear(next(ki), hidden_dim, hidden_dim)
        p[f'{pref}_conv2_lin'] = linear(next(ki), edge_emb_dim, hidden_dim)
        p[f'{pref}_conv2_nn'] = linear(next(ki), hidden_dim, hidden_dim) + \
                                linear(next(ki), hidden_dim, hidden_dim)
    in_dim = hidden_dim * 2 + 1
    p['classifier'] = linear(next(ki), in_dim, hidden_dim) + linear(next(ki), hidden_dim, 1)
    return p


def build_graph_inputs(node_names, edge_attr, edge_index, batch, num_nodes, num_graphs):
    src, dst = edge_index[0], edge_index[1]
    node_ids = jnp.arange(num_nodes)
    G = (src[:, None] == node_ids[None, :]).astype(jnp.float32)           # [E, N] src one-hot
    D = (dst[:, None] == node_ids[None, :]).astype(jnp.float32)           # [E, N] dst one-hot
    graph_ids = jnp.arange(num_graphs)
    onehot = (batch[None, :] == graph_ids[:, None]).astype(jnp.float32)   # [B, N]
    counts = jnp.maximum(onehot.sum(axis=1, keepdims=True), 1.0)
    P = onehot / counts                                                    # [B, N] mean-pool
    return {'node_names': node_names.astype(jnp.float32),
            'edge_attr': edge_attr.astype(jnp.float32),
            'G': G, 'D': D, 'P': P}


# ----------------------------------------------------------------------------
# Pure-JAX reference (correctness check only).
# ----------------------------------------------------------------------------
def _ref_forward(params, batch_inputs):
    def mlp2(x, w1, b1, w2, b2):
        return jnp.maximum(x @ w1 + b1, 0.0) @ w2 + b2

    def encode(gr, prefix):
        x = jnp.clip(gr['node_names'] * INV_TWO_48, 0.0, 1.0)
        x = mlp2(x, *params['id_mlp'])
        e = mlp2(gr['edge_attr'], *params['edge_mlp'])
        for c in ('conv1', 'conv2'):
            lw, lb = params[f'{prefix}_{c}_lin']
            msg = jnp.maximum(gr['G'] @ x + (e @ lw + lb), 0.0)
            h = gr['D'].T @ msg + x
            x = jnp.maximum(mlp2(h, *params[f'{prefix}_{c}_nn']), 0.0)
        return gr['P'] @ x

    s = encode(batch_inputs['state_graph'], 'state')
    g = encode(batch_inputs['goal_graph'], 'goal')
    z = jnp.concatenate([s, g, batch_inputs['depth'].reshape(-1, 1)], axis=1)
    return mlp2(z, *params['classifier'])[:, 0]


# ----------------------------------------------------------------------------
# Main
# ----------------------------------------------------------------------------
if __name__ == "__main__":
    key = jax.random.PRNGKey(0)
    k_par, k_s, k_g, k_d = jax.random.split(key, 4)

    HIDDEN, NODE_EMB, EDGE_EMB = 32, 32, 32
    B, N, E = 2, 16, 24   # 2 graphs per batch, 16 nodes / 24 edges total

    params = init_params(k_par, HIDDEN, NODE_EMB, EDGE_EMB)
    packed = pack_model_params(params, NODE_EMB, EDGE_EMB, HIDDEN)

    def make_graph(k):
        k1, k2, k3 = jax.random.split(k, 3)
        node_names = jax.random.uniform(k1, (N, 1), jnp.float32, 0.0, TWO_48_MINUS_1)
        edge_attr = jax.random.uniform(k2, (E, 1), jnp.float32, 0.0, 1.0)
        edge_index = jax.random.randint(k3, (2, E), 0, N)
        batch = jnp.concatenate([jnp.zeros(N // 2, jnp.int32), jnp.ones(N - N // 2, jnp.int32)])
        return build_graph_inputs(node_names, edge_attr, edge_index, batch, N, B)

    batch_inputs = {
        'state_graph': make_graph(k_s),
        'goal_graph': make_graph(k_g),
        'depth': jax.random.randint(k_d, (B,), 0, 10).astype(jnp.float32),
    }

    # edge_tile=16 -> E padded to 32 with 2 edge tiles per layer, exercising the
    # tiled scatter-add accumulation path.
    logits = forward(packed, batch_inputs, edge_tile=16)
    logits = jax.block_until_ready(logits)

    ref = _ref_forward(params, batch_inputs)
    # bf16 MXU operands (f32 accumulation) -> loosened tolerance vs f32 reference.
    np.testing.assert_allclose(np.asarray(logits), np.asarray(ref), rtol=3e-2, atol=3e-2)

    print("KERNEL_OK")
</pallas_src>

<mosaic_0001>
module attributes {stable_mosaic.version = 11 : i64} {
  func.func @_encode_kernel(%arg0: i32, %arg1: i32, %arg2: i32, %arg3: memref<1x16x1xf32, #tpu.memory_space<vmem>>, %arg4: memref<1x16x1xf32, #tpu.memory_space<vmem>>, %arg5: memref<1x16x16xbf16, #tpu.memory_space<vmem>>, %arg6: memref<1x16x16xbf16, #tpu.memory_space<vmem>>, %arg7: memref<1x2x16xf32, #tpu.memory_space<vmem>>, %arg8: memref<72x32xf32, #tpu.memory_space<vmem>>, %arg9: memref<1x120x32xf32, #tpu.memory_space<vmem>>, %arg10: memref<1x2x32xf32, #tpu.memory_space<vmem>>, %arg11: memref<16x32xf32, #tpu.memory_space<vmem>>, %arg12: memref<16x32xf32, #tpu.memory_space<vmem>>, %arg13: memref<16x32xbf16, #tpu.memory_space<vmem>>) attributes {dimension_semantics = [#tpu.dimension_semantics<parallel>, #tpu.dimension_semantics<arbitrary>, #tpu.dimension_semantics<arbitrary>], iteration_bounds = array<i64: 2, 2, 2>, scalar_prefetch = 0 : i64, scratch_operands = 3 : i64, tpu.core_type = #tpu.core_type<tc>, window_params = [{transform_indices = @transform_0, window_bounds = array<i64: 1, 16, 1>}, {transform_indices = @transform_1, window_bounds = array<i64: 1, 16, 1>}, {transform_indices = @transform_2, window_bounds = array<i64: 1, 16, 16>}, {transform_indices = @transform_3, window_bounds = array<i64: 1, 16, 16>}, {transform_indices = @transform_4, window_bounds = array<i64: 1, 2, 16>}, {pipeline_mode = #tpu.pipeline_mode<synchronous>, transform_indices = @transform_5, window_bounds = array<i64: 72, 32>}, {transform_indices = @transform_6, window_bounds = array<i64: 1, 120, 32>}, {transform_indices = @transform_7, window_bounds = array<i64: 1, 2, 32>}]} {
    %c0_i32 = arith.constant 0 : i32
    %0 = arith.cmpi eq, %arg1, %c0_i32 : i32
    %c0_i32_0 = arith.constant 0 : i32
    %1 = arith.cmpi eq, %arg2, %c0_i32_0 : i32
    %2 = arith.andi %0, %1 : i1
    %3 = arith.extui %2 : i1 to i32
    %c0_i32_1 = arith.constant 0 : i32
    %4 = arith.cmpi ne, %3, %c0_i32_1 : i32
    scf.if %4 {
      %c0_34 = arith.constant 0 : index
      %c0_35 = arith.constant 0 : index
      %c0_36 = arith.constant 0 : index
      %50 = vector.load %arg3[%c0_34, %c0_35, %c0_36] : memref<1x16x1xf32, #tpu.memory_space<vmem>>, vector<1x16x1xf32>
      %51 = vector.shape_cast %50 : vector<1x16x1xf32> to vector<16x1xf32>
      %cst_37 = arith.constant 3.55271368E-15 : f32
      %52 = vector.broadcast %cst_37 : f32 to vector<16x1xf32>
      %53 = arith.mulf %51, %52 : vector<16x1xf32>
      %cst_38 = arith.constant 0.000000e+00 : f32
      %cst_39 = arith.constant 1.000000e+00 : f32
      %54 = vector.broadcast %cst_38 : f32 to vector<16x1xf32>
      %55 = arith.maximumf %54, %53 : vector<16x1xf32>
      %56 = vector.broadcast %cst_39 : f32 to vector<16x1xf32>
      %57 = arith.minimumf %56, %55 : vector<16x1xf32>
      %c16 = arith.constant 16 : index
      %c0_40 = arith.constant 0 : index
      %58 = vector.load %arg8[%c16, %c0_40] : memref<72x32xf32, #tpu.memory_space<vmem>>, vector<1x32xf32>
      %59 = vector.broadcast %57 : vector<16x1xf32> to vector<16x32xf32>
      %60 = vector.broadcast %58 : vector<1x32xf32> to vector<16x32xf32>
      %61 = arith.mulf %59, %60 : vector<16x32xf32>
      %c24 = arith.constant 24 : index
      %c0_41 = arith.constant 0 : index
      %62 = vector.load %arg8[%c24, %c0_41] : memref<72x32xf32, #tpu.memory_space<vmem>>, vector<1x32xf32>
      %63 = vector.broadcast %62 : vector<1x32xf32> to vector<16x32xf32>
      %64 = arith.addf %61, %63 : vector<16x32xf32>
      %cst_42 = arith.constant 0.000000e+00 : f32
      %65 = vector.broadcast %cst_42 : f32 to vector<16x32xf32>
      %66 = arith.maximumf %64, %65 : vector<16x32xf32>
      %67 = arith.truncf %66 : vector<16x32xf32> to vector<16x32xbf16>
      %c32_43 = arith.constant 32 : index
      %c0_44 = arith.constant 0 : index
      %68 = vector.load %arg8[%c32_43, %c0_44] : memref<72x32xf32, #tpu.memory_space<vmem>>, vector<32x32xf32>
      %69 = arith.truncf %68 : vector<32x32xf32> to vector<32x32xbf16>
      %cst_45 = arith.constant dense<0.000000e+00> : vector<16x32xf32>
      %70 = tpu.matmul %67, %69, %cst_45 {dimension_numbers = #tpu.dot_dimension_numbers<[1], [0], [0], [1], [0, 0, 1, 1], [], []>} : vector<16x32xbf16>, vector<32x32xbf16>, vector<16x32xf32> -> vector<16x32xf32>
      %c64 = arith.constant 64 : index
      %c0_46 = arith.constant 0 : index
      %71 = vector.load %arg8[%c64, %c0_46] : memref<72x32xf32, #tpu.memory_space<vmem>>, vector<1x32xf32>
      %72 = vector.broadcast %71 : vector<1x32xf32> to vector<16x32xf32>
      %73 = arith.addf %70, %72 : vector<16x32xf32>
      %c0_47 = arith.constant 0 : index
      %c0_48 = arith.constant 0 : index
      %74 = vector.load %arg11[%c0_47, %c0_48] : memref<16x32xf32, #tpu.memory_space<vmem>>, vector<16x32xf32>
      tpu.vector_store %arg11[%c0_47, %c0_48], %73 {strides = array<i32>} : memref<16x32xf32, #tpu.memory_space<vmem>>, vector<16x32xf32>,
    } else {
    }
    %c0_i32_2 = arith.constant 0 : i32
    %5 = arith.cmpi eq, %arg2, %c0_i32_2 : i32
    %6 = arith.extui %5 : i1 to i32
    %c0_i32_3 = arith.constant 0 : i32
    %7 = arith.cmpi ne, %6, %c0_i32_3 : i32
    scf.if %7 {
      %cst_34 = arith.constant 0.000000e+00 : f32
      %50 = vector.broadcast %cst_34 : f32 to vector<16x32xf32>
      %c0_35 = arith.constant 0 : index
      %c0_36 = arith.constant 0 : index
      %51 = vector.load %arg12[%c0_35, %c0_36] : memref<16x32xf32, #tpu.memory_space<vmem>>, vector<16x32xf32>
      tpu.vector_store %arg12[%c0_35, %c0_36], %50 {strides = array<i32>} : memref<16x32xf32, #tpu.memory_space<vmem>>, vector<16x32xf32>,
      %c0_37 = arith.constant 0 : index
      %c0_38 = arith.constant 0 : index
      %52 = vector.load %arg11[%c0_37, %c0_38] : memref<16x32xf32, #tpu.memory_space<vmem>>, vector<16x32xf32>
      %53 = arith.truncf %52 : vector<16x32xf32> to vector<16x32xbf16>
      %c0_39 = arith.constant 0 : index
      %c0_40 = arith.constant 0 : index
      %54 = vector.load %arg13[%c0_39, %c0_40] : memref<16x32xbf16, #tpu.memory_space<vmem>>, vector<16x32xbf16>
      tpu.vector_store %arg13[%c0_39, %c0_40], %53 {strides = array<i32>} : memref<16x32xbf16, #tpu.memory_space<vmem>>, vector<16x32xbf16>,
    } else {
    }
    %c0 = arith.constant 0 : index
    %c0_4 = arith.constant 0 : index
    %c0_5 = arith.constant 0 : index
    %8 = vector.load %arg4[%c0, %c0_4, %c0_5] : memref<1x16x1xf32, #tpu.memory_space<vmem>>, vector<1x16x1xf32>
    %9 = vector.shape_cast %8 : vector<1x16x1xf32> to vector<16x1xf32>
    %c0_6 = arith.constant 0 : index
    %c0_7 = arith.constant 0 : index
    %10 = vector.load %arg8[%c0_6, %c0_7] : memref<72x32xf32, #tpu.memory_space<vmem>>, vector<1x32xf32>
    %11 = vector.broadcast %9 : vector<16x1xf32> to vector<16x32xf32>
    %12 = vector.broadcast %10 : vector<1x32xf32> to vector<16x32xf32>
    %13 = arith.mulf %11, %12 : vector<16x32xf32>
    %c8 = arith.constant 8 : index
    %c0_8 = arith.constant 0 : index
    %14 = vector.load %arg8[%c8, %c0_8] : memref<72x32xf32, #tpu.memory_space<vmem>>, vector<1x32xf32>
    %15 = vector.broadcast %14 : vector<1x32xf32> to vector<16x32xf32>
    %16 = arith.addf %13, %15 : vector<16x32xf32>
    %cst = arith.constant 0.000000e+00 : f32
    %17 = vector.broadcast %cst : f32 to vector<16x32xf32>
    %18 = arith.maximumf %16, %17 : vector<16x32xf32>
    %19 = arith.truncf %18 : vector<16x32xf32> to vector<16x32xbf16>
    %c0_9 = arith.constant 0 : index
    %c0_10 = arith.constant 0 : index
    %c0_11 = arith.constant 0 : index
    %20 = vector.load %arg9[%c0_9, %c0_10, %c0_11] : memref<1x120x32xf32, #tpu.memory_space<vmem>>, vector<1x32x32xf32>
    %21 = vector.shape_cast %20 : vector<1x32x32xf32> to vector<32x32xf32>
    %22 = arith.truncf %21 : vector<32x32xf32> to vector<32x32xbf16>
    %cst_12 = arith.constant dense<0.000000e+00> : vector<16x32xf32>
    %23 = tpu.matmul %19, %22, %cst_12 {dimension_numbers = #tpu.dot_dimension_numbers<[1], [0], [0], [1], [0, 0, 1, 1], [], []>} : vector<16x32xbf16>, vector<32x32xbf16>, vector<16x32xf32> -> vector<16x32xf32>
    %c0_13 = arith.constant 0 : index
    %c32 = arith.constant 32 : index
    %c0_14 = arith.constant 0 : index
    %24 = vector.load %arg9[%c0_13, %c32, %c0_14] : memref<1x120x32xf32, #tpu.memory_space<vmem>>, vector<1x1x32xf32>
    %25 = vector.shape_cast %24 : vector<1x1x32xf32> to vector<1x32xf32>
    %26 = vector.broadcast %25 : vector<1x32xf32> to vector<16x32xf32>
    %27 = arith.addf %23, %26 : vector<16x32xf32>
    %c0_15 = arith.constant 0 : index
    %c0_16 = arith.constant 0 : index
    %c0_17 = arith.constant 0 : index
    %28 = vector.load %arg5[%c0_15, %c0_16, %c0_17] : memref<1x16x16xbf16, #tpu.memory_space<vmem>>, vector<1x16x16xbf16>
    %29 = vector.shape_cast %28 : vector<1x16x16xbf16> to vector<16x16xbf16>
    %c0_18 = arith.constant 0 : index
    %c0_19 = arith.constant 0 : index
    %30 = vector.load %arg13[%c0_18, %c0_19] : memref<16x32xbf16, #tpu.memory_space<vmem>>, vector<16x32xbf16>
    %cst_20 = arith.constant dense<0.000000e+00> : vector<16x32xf32>
    %31 = tpu.matmul %29, %30, %cst_20 {dimension_numbers = #tpu.dot_dimension_numbers<[1], [0], [0], [1], [0, 0, 1, 1], [], []>} : vector<16x16xbf16>, vector<16x32xbf16>, vector<16x32xf32> -> vector<16x32xf32>
    %32 = arith.addf %31, %27 : vector<16x32xf32>
    %cst_21 = arith.constant 0.000000e+00 : f32
    %33 = vector.broadcast %cst_21 : f32 to vector<16x32xf32>
    %34 = arith.maximumf %32, %33 : vector<16x32xf32>
    %c0_22 = arith.constant 0 : index
    %c0_23 = arith.constant 0 : index
    %35 = vector.load %arg12[%c0_22, %c0_23] : memref<16x32xf32, #tpu.memory_space<vmem>>, vector<16x32xf32>
    %c0_24 = arith.constant 0 : index
    %c0_25 = arith.constant 0 : index
    %c0_26 = arith.constant 0 : index
    %36 = vector.load %arg6[%c0_24, %c0_25, %c0_26] : memref<1x16x16xbf16, #tpu.memory_space<vmem>>, vector<1x16x16xbf16>
    %37 = vector.shape_cast %36 : vector<1x16x16xbf16> to vector<16x16xbf16>
    %38 = arith.truncf %34 : vector<16x32xf32> to vector<16x32xbf16>
    %cst_27 = arith.constant dense<0.000000e+00> : vector<16x32xf32>
    %39 = tpu.matmul %37, %38, %cst_27 {dimension_numbers = #tpu.dot_dimension_numbers<[0], [0], [1], [1], [0, 1, 1, 1], [], []>} : vector<16x16xbf16>, vector<16x32xbf16>, vector<16x32xf32> -> vector<16x32xf32>
    %40 = arith.addf %35, %39 : vector<16x32xf32>
    %c0_28 = arith.constant 0 : index
    %c0_29 = arith.constant 0 : index
    %41 = vector.load %arg12[%c0_28, %c0_29] : memref<16x32xf32, #tpu.memory_space<vmem>>, vector<16x32xf32>
    tpu.vector_store %arg12[%c0_28, %c0_29], %40 {strides = array<i32>} : memref<16x32xf32, #tpu.memory_space<vmem>>, vector<16x32xf32>,
    %c1_i32 = arith.constant 1 : i32
    %42 = arith.cmpi eq, %arg2, %c1_i32 : i32
    %43 = arith.extui %42 : i1 to i32
    %c0_i32_30 = arith.constant 0 : i32
    %44 = arith.cmpi ne, %43, %c0_i32_30 : i32
    scf.if %44 {
      %c0_34 = arith.constant 0 : index
      %c0_35 = arith.constant 0 : index
      %50 = vector.load %arg12[%c0_34, %c0_35] : memref<16x32xf32, #tpu.memory_space<vmem>>, vector<16x32xf32>
      %c0_36 = arith.constant 0 : index
      %c0_37 = arith.constant 0 : index
      %51 = vector.load %arg11[%c0_36, %c0_37] : memref<16x32xf32, #tpu.memory_space<vmem>>, vector<16x32xf32>
      %52 = arith.addf %50, %51 : vector<16x32xf32>
      %53 = arith.truncf %52 : vector<16x32xf32> to vector<16x32xbf16>
      %c0_38 = arith.constant 0 : index
      %c40 = arith.constant 40 : index
      %c0_39 = arith.constant 0 : index
      %54 = vector.load %arg9[%c0_38, %c40, %c0_39] : memref<1x120x32xf32, #tpu.memory_space<vmem>>, vector<1x32x32xf32>
      %55 = vector.shape_cast %54 : vector<1x32x32xf32> to vector<32x32xf32>
      %56 = arith.truncf %55 : vector<32x32xf32> to vector<32x32xbf16>
      %cst_40 = arith.constant dense<0.000000e+00> : vector<16x32xf32>
      %57 = tpu.matmul %53, %56, %cst_40 {dimension_numbers = #tpu.dot_dimension_numbers<[1], [0], [0], [1], [0, 0, 1, 1], [], []>} : vector<16x32xbf16>, vector<32x32xbf16>, vector<16x32xf32> -> vector<16x32xf32>
      %c0_41 = arith.constant 0 : index
      %c72 = arith.constant 72 : index
      %c0_42 = arith.constant 0 : index
      %58 = vector.load %arg9[%c0_41, %c72, %c0_42] : memref<1x120x32xf32, #tpu.memory_space<vmem>>, vector<1x1x32xf32>
      %59 = vector.shape_cast %58 : vector<1x1x32xf32> to vector<1x32xf32>
      %60 = vector.broadcast %59 : vector<1x32xf32> to vector<16x32xf32>
      %61 = arith.addf %57, %60 : vector<16x32xf32>
      %cst_43 = arith.constant 0.000000e+00 : f32
      %62 = vector.broadcast %cst_43 : f32 to vector<16x32xf32>
      %63 = arith.maximumf %61, %62 : vector<16x32xf32>
      %64 = arith.truncf %63 : vector<16x32xf32> to vector<16x32xbf16>
      %c0_44 = arith.constant 0 : index
      %c80 = arith.constant 80 : index
      %c0_45 = arith.constant 0 : index
      %65 = vector.load %arg9[%c0_44, %c80, %c0_45] : memref<1x120x32xf32, #tpu.memory_space<vmem>>, vector<1x32x32xf32>
      %66 = vector.shape_cast %65 : vector<1x32x32xf32> to vector<32x32xf32>
      %67 = arith.truncf %66 : vector<32x32xf32> to vector<32x32xbf16>
      %cst_46 = arith.constant dense<0.000000e+00> : vector<16x32xf32>
      %68 = tpu.matmul %64, %67, %cst_46 {dimension_numbers = #tpu.dot_dimension_numbers<[1], [0], [0], [1], [0, 0, 1, 1], [], []>} : vector<16x32xbf16>, vector<32x32xbf16>, vector<16x32xf32> -> vector<16x32xf32>
      %c0_47 = arith.constant 0 : index
      %c112 = arith.constant 112 : index
      %c0_48 = arith.constant 0 : index
      %69 = vector.load %arg9[%c0_47, %c112, %c0_48] : memref<1x120x32xf32, #tpu.memory_space<vmem>>, vector<1x1x32xf32>
      %70 = vector.shape_cast %69 : vector<1x1x32xf32> to vector<1x32xf32>
      %71 = vector.broadcast %70 : vector<1x32xf32> to vector<16x32xf32>
      %72 = arith.addf %68, %71 : vector<16x32xf32>
      %cst_49 = arith.constant 0.000000e+00 : f32
      %73 = vector.broadcast %cst_49 : f32 to vector<16x32xf32>
      %74 = arith.maximumf %72, %73 : vector<16x32xf32>
      %c0_50 = arith.constant 0 : index
      %c0_51 = arith.constant 0 : index
      %75 = vector.load %arg11[%c0_50, %c0_51] : memref<16x32xf32, #tpu.memory_space<vmem>>, vector<16x32xf32>
      tpu.vector_store %arg11[%c0_50, %c0_51], %74 {strides = array<i32>} : memref<16x32xf32, #tpu.memory_space<vmem>>, vector<16x32xf32>,
    } else {
    }
    %c1_i32_31 = arith.constant 1 : i32
    %45 = arith.cmpi eq, %arg2, %c1_i32_31 : i32
    %c1_i32_32 = arith.constant 1 : i32
    %46 = arith.cmpi eq, %arg1, %c1_i32_32 : i32
    %47 = arith.andi %45, %46 : i1
    %48 = arith.extui %47 : i1 to i32
    %c0_i32_33 = arith.constant 0 : i32
    %49 = arith.cmpi ne, %48, %c0_i32_33 : i32
    scf.if %49 {
      %c0_34 = arith.constant 0 : index
      %c0_35 = arith.constant 0 : index
      %c0_36 = arith.constant 0 : index
      %50 = vector.load %arg7[%c0_34, %c0_35, %c0_36] : memref<1x2x16xf32, #tpu.memory_space<vmem>>, vector<1x2x16xf32>
      %51 = vector.shape_cast %50 : vector<1x2x16xf32> to vector<2x16xf32>
      %c0_37 = arith.constant 0 : index
      %c0_38 = arith.constant 0 : index
      %52 = vector.load %arg11[%c0_37, %c0_38] : memref<16x32xf32, #tpu.memory_space<vmem>>, vector<16x32xf32>
      %cst_39 = arith.constant dense<0.000000e+00> : vector<2x32xf32>
      %53 = tpu.matmul %51, %52, %cst_39 {dimension_numbers = #tpu.dot_dimension_numbers<[1], [0], [0], [1], [0, 0, 1, 1], [], []>} : vector<2x16xf32>, vector<16x32xf32>, vector<2x32xf32> -> vector<2x32xf32>
      %c0_40 = arith.constant 0 : index
      %c0_41 = arith.constant 0 : index
      %c0_42 = arith.constant 0 : index
      %54 = vector.load %arg10[%c0_40, %c0_41, %c0_42] : memref<1x2x32xf32, #tpu.memory_space<vmem>>, vector<1x2x32xf32>
      %55 = vector.shape_cast %54 : vector<1x2x32xf32> to vector<2x32xf32>
      %56 = vector.shape_cast %53 : vector<2x32xf32> to vector<1x2x32xf32>
      tpu.vector_store %arg10[%c0_40, %c0_41, %c0_42], %56 {strides = array<i32>} : memref<1x2x32xf32, #tpu.memory_space<vmem>>, vector<1x2x32xf32>,
    } else {
    }
    return
  }
  func.func @transform_0(%arg0: i32, %arg1: i32, %arg2: i32) -> (i32, i32, i32) {
    %c0_i32 = arith.constant 0 : i32
    %c0_i32_0 = arith.constant 0 : i32
    %c0_i32_1 = arith.constant 0 : i32
    return %arg0, %c0_i32, %c0_i32_0 : i32, i32, i32
  }
  func.func @transform_1(%arg0: i32, %arg1: i32, %arg2: i32) -> (i32, i32, i32) {
    %c0_i32 = arith.constant 0 : i32
    %c0_i32_0 = arith.constant 0 : i32
    return %arg0, %arg2, %c0_i32 : i32, i32, i32
  }
  func.func @transform_2(%arg0: i32, %arg1: i32, %arg2: i32) -> (i32, i32, i32) {
    %c0_i32 = arith.constant 0 : i32
    %c0_i32_0 = arith.constant 0 : i32
    return %arg0, %arg2, %c0_i32 : i32, i32, i32
  }
  func.func @transform_3(%arg0: i32, %arg1: i32, %arg2: i32) -> (i32, i32, i32) {
    %c0_i32 = arith.constant 0 : i32
    %c0_i32_0 = arith.constant 0 : i32
    return %arg0, %arg2, %c0_i32 : i32, i32, i32
  }
  func.func @transform_4(%arg0: i32, %arg1: i32, %arg2: i32) -> (i32, i32, i32) {
    %c0_i32 = arith.constant 0 : i32
    %c0_i32_0 = arith.constant 0 : i32
    %c0_i32_1 = arith.constant 0 : i32
    return %arg0, %c0_i32, %c0_i32_0 : i32, i32, i32
  }
  func.func @transform_5(%arg0: i32, %arg1: i32, %arg2: i32) -> (i32, i32) {
    %c0_i32 = arith.constant 0 : i32
    %c0_i32_0 = arith.constant 0 : i32
    %c0_i32_1 = arith.constant 0 : i32
    return %c0_i32, %c0_i32_0 : i32, i32
  }
  func.func @transform_6(%arg0: i32, %arg1: i32, %arg2: i32) -> (i32, i32, i32) {
    %c2_i32 = arith.constant 2 : i32
    %0 = arith.muli %arg0, %c2_i32 : i32
    %1 = arith.addi %0, %arg1 : i32
    %c0_i32 = arith.constant 0 : i32
    %c0_i32_0 = arith.constant 0 : i32
    %c0_i32_1 = arith.constant 0 : i32
    return %1, %c0_i32, %c0_i32_0 : i32, i32, i32
  }
  func.func @transform_7(%arg0: i32, %arg1: i32, %arg2: i32) -> (i32, i32, i32) {
    %c0_i32 = arith.constant 0 : i32
    %c0_i32_0 = arith.constant 0 : i32
    %c0_i32_1 = arith.constant 0 : i32
    return %arg0, %c0_i32, %c0_i32_0 : i32, i32, i32
  }
}

</mosaic_0001>

<bundles_post_ra>
// kernel: tpu_custom_call.1
= control target key start
LH: loop header
LB: loop body
LE: loop exit
PB: predicated region body
PF: predicated region fallthrough
CT: control target
= control target key end

     0   :  { %s1801_s0 = inlined_call_operand.vmem [shape: f32[2,16,1], index: 0, kind: input, shape index: {}]   ;;  %s1802_s1 = inlined_call_operand.vmem [shape: f32[2,32,1], index: 1, kind: input, shape index: {}]   ;;  %s1803_s2 = inlined_call_operand.vmem [shape: bf16[2,32,16], index: 2, kind: input, shape index: {}]   ;;  %s1804_s3 = inlined_call_operand.vmem [shape: bf16[2,32,16], index: 3, kind: input, shape index: {}]   ;;  %s1805_s4 = inlined_call_operand.vmem [shape: f32[2,2,16], index: 4, kind: input, shape index: {}]   ;;  %s1806_s5 = inlined_call_operand.vmem [shape: f32[72,32], index: 5, kind: input, shape index: {}]   ;;  %s1807_s6 = inlined_call_operand.vmem [shape: f32[4,120,32], index: 6, kind: input, shape index: {}]   ;;  %s1808_s7 = inlined_call_operand.hbm [shape: f32[2,2,32], index: 7, kind: output, shape index: {}]  }
   0x1   :  { %1822 = sst [smem:[#allocation20_spill]] %s1808_s7 }
   0x2   :  { %12 = vsyncpa [#allocation6], 0 }
   0x3   :  { %14 = vsyncpa [#allocation6 + $0x1], 0  ;;  %s1551_s24 = smov 0   ;;  %s1553_s25 = smov 0  }
   0x4   :  { %s1555_s26 = smov 0   ;;  %s1557_s27 = smov 0  }
   0x5   :  { %s1559_s28 = smov 0   ;;  %s1561_s29 = smov 0  }
   0x6   :  { %s1563_s30 = smov 0   ;;  %s1565_s8 = smov 0  }
   0x7   :  { %s1567_s9 = smov 0   ;;  %s1569_s10 = smov 0  }
   0x8 LB: > { %1823 = sst [smem:[#allocation8_spill]] %s1460_s24  ;;  %s1159_s11 = sadd.s32 4294967295, %s1496_s10   ;;  %s1496_s10 = sphi %s1569_s10, %s20_s10   ;;  %s1492_s9 = sphi %s1567_s9, %s1850_s9   ;;  %s1488_s8 = sphi %s1565_s8, %s1849_s8   ;;  %s1484_s30 = sphi %s1563_s30, %s1848_s30   ;;  %s1480_s29 = sphi %s1561_s29, %s1847_s29   ;;  %s1476_s28 = sphi %s1559_s28, %s1853_s28   ;;  %s1472_s27 = sphi %s1557_s27, %s1845_s27   ;;  %s1468_s26 = sphi %s1555_s26, %s1844_s26   ;;  %s1464_s25 = sphi %s1553_s25, %s1852_s25   ;;  %s1460_s24 = sphi %s1551_s24, %s1851_s24  }
   0x9   : > { %1824 = sst [smem:[#allocation9_spill]] %s1468_s26  ;;  %s1160_s12 = sadd.s32 4294967294, %s1496_s10  }
   0xa   : > { %1825 = sst [smem:[#allocation10_spill]] %s1484_s30  ;;  %s32_s13 = sadd.s32 1, %s1484_s30 }
   0xb   : > { %1826 = sst [smem:[#allocation11_spill]] %s1488_s8  ;;  %p33_p0 = scmp.ge.s32.totalorder %s32_s13, 2 }
   0xc   : > { %1827 = sst [smem:[#allocation12_spill]] %s1492_s9  ;;  %s35_s14 = sadd.s32 1, %s1488_s8 }
   0xd   : > { %1828 = sst [smem:[#allocation13_spill]] %s1496_s10  ;;  %s39_s15 = sadd.s32 1, %s1492_s9 }
   0xe   : > { %p243_p1 = scmp.ne.s32.totalorder %s1468_s26, %s1464_s25  ;;  %s1855_s13 = smov (%p33_p0, %s32_s13), 0 }
   0xf   : > { %1829 = sst [smem:[#allocation14_spill]] %s1855_s13  ;;  %s1857_s14 = smov (!%p33_p0, %s35_s14), %s1488_s8 }
  0x10   : > { %p244_p2 = scmp.eq.s32.totalorder %s1159_s11, 7  ;;  %p249_p3 = scmp.ne.s32.totalorder %s1464_s25, %s1460_s24 }
  0x11   : > { %p37_p4 = scmp.ge.s32.totalorder %s1857_s14, 2  ;;  %p250_p5 = scmp.eq.s32.totalorder %s1160_s12, 7 }
  0x12   : > { %p1613_p6 = por %p244_p2, %p243_p1  ;;  %p1165_p7 = scmp.ge.s32.totalorder %s1496_s10, 1 }
  0x13   : > { %s1859_s14 = smov (%p37_p4, %s1857_s14), 0  ;;  %s1861_s15 = smov (!%p37_p4, %s39_s15), %s1492_s9 }
  0x14   : > { %s1830_s16 = scalar_select %p1613_p6, 1, 0 }
  0x15   : > { %1832 = sst [smem:[#allocation16_spill]] %s1859_s14  ;;  %p1621_p8 = por %p250_p5, %p249_p3 }
  0x16   : > { %1831 = sst [smem:[#allocation15_spill]] %s1830_s16  ;;  %p337_p9 = scmp.lt.s32.totalorder %s1496_s10, 9 }
  0x17   : > { %s1833_s17 = scalar_select %p1621_p8, 1, 0 }
  0x18   : > { %p41_p10 = scmp.ge.s32.totalorder %s1861_s15, 2  ;;  %p338_p11 = pnand %p1165_p7, %p337_p9 }
  0x19   : > { %1834 = sst [smem:[#allocation17_spill]] %s1833_s17  ;;  %s233_s19 = sadd.s32 1, %s1468_s26 }
  0x1a   : > { %s1863_s15 = smov (%p41_p10, %s1861_s15), 0  ;;  %341 = sbr.rel (%p338_p11) target bundleno = 1701 (0x6a5), region = 48 }
  0x1b   : > { %1835 = sst [smem:[#allocation18_spill]] %s1863_s15  ;;  %s230_s18 = ssub.s32 %s1492_s9, %s1863_s15 }
  0x1c   : > { %p231_p12 = scmp.eq.s32.totalorder %s230_s18, 0  ;;  %s1812_s21 = sand.u32 (!%p338_p11), 1, %s1464_s25  }
  0x1d   : > { %p407_p13 = scmp.lt.s32.totalorder (!%p338_p11), %s1480_s29, 1  ;;  %s1638_s22 = sshll.u32 (!%p338_p11), %s1812_s21, 1 }
  0x1e   : > { %s1632_s20 = scalar_select %p231_p12, %s1468_s26, %s233_s19  }
  0x1f   : > { %s1169_s23 = sshll.u32 (!%p338_p11), %s1472_s27, 1  ;;  %p456_p1 = scmp.eq.s32.totalorder (!%p338_p11), %s1476_s28, 0 }
  0x20   : > { %1836 = sst [smem:[#allocation19_spill]] %s1632_s20  ;;  %p415_p0 = scmp.lt.s32.totalorder (!%p338_p11), %s1169_s23, 3 }
  0x21   : > { %s408_s11 = scalar_select %p407_p13, %s1480_s29, 1 }
  0x22   : > { %s1865_s23 = smov (!%p415_p0, %s1169_s23), 3  ;;  %p457_p3 = scmp.eq.s32.totalorder %s1472_s27, 0 }
  0x23   : > { %s1204_s12 = sshll.u32 %s408_s11, 4  ;;  %s1170_s18 = sshll.u32 %s408_s11, 2 }
  0x24   : > { %s411_s14 = scalar_lea.vmem %s1801_s0, %s1204_s12  ;;  %s418_s13 = sadd.s32 %s1170_s18, %s1865_s23 }
  0x25   : > { %s1171_s9 = sshll.u32 %s418_s13, 3  ;;  %s1174_s8 = sshll.u32 %s418_s13, 2 }
  0x26   : > { %s1648_s20 = scalar_lea.vmem %s1802_s1, %s1171_s9  ;;  %s1653_s24 = scalar_lea.vmem %s1803_s2, %s1174_s8 }
  0x27   : > { %s1658_s16 = scalar_lea.vmem %s1804_s3, %s1174_s8  ;;  %s1178_s15 = sshll.u32 %s408_s11, 1 }
  0x28   : > { %s1663_s13 = scalar_lea.vmem %s1805_s4, %s1178_s15  ;;  %s1179_s18 = sshll.u32 %s1480_s29, 1 }
  0x29   : > { %s447_s30 = sadd.s32 %s1476_s28, %s1179_s18  ;;  %p458_p4 = pnand %p457_p3, %p456_p1 }
  0x2a   : > { %p448_p2 = scmp.lt.s32.totalorder %s447_s30, 3  ;;  %s406_s8 = scalar_lea.vmem [#allocation5], %s1638_s22  ;;  %v462_v0 = vld [vmem:[%s411_s14] sm:$0xff] (!%p458_p4)  ;;  %v463_v1 = vld [vmem:[%s411_s14 + $0x8] sm:$0xff] (!%p458_p4)  ;;  %v1498_v2 = vmov (!%p458_p4), 0   ;;  %v1499_v12 = vmov (!%p458_p4), 0.0  }
  0x2b   : > { %461 = sbr.rel (%p458_p4) target bundleno = 406 (0x196), region = 52  ;;  %1382 = vset.pattern.permute.xlu0 (!%p458_p4), %v1498_v2  ;;  %v464_v3 = vmul.f32 (!%p458_p4), 3.5527137e-15, %v462_v0  ;;  %v465_v4 = vmul.f32 (!%p458_p4), 3.5527137e-15, %v463_v1  ;;  %v497_v9 = vld [vmem:[%s1806_s5 + $0x20] sm:$0xff] (!%p458_p4)  ;;  %v498_v10 = vld [vmem:[%s1806_s5 + $0x28] sm:$0xff] (!%p458_p4)  ;;  %1224 = vmatprep.subr.bf16.mxu0 (!%p458_p4), %v1499_v12  ;;  %v499_v13 = vld [vmem:[%s1806_s5 + $0x30] sm:$0xff] (!%p458_p4) }
  0x2c   : > { %s1867_s30 = smov (!%p448_p2, %s447_s30), 3  ;;  %v501_v11 = vpack.c.bf16 (!%p458_p4), %v498_v10, %v497_v9  ;;  %v500_v14 = vld [vmem:[%s1806_s5 + $0x38] sm:$0xff] (!%p458_p4)  ;;  %vm1500_vm0 = vmmov (!%p458_p4), 0   ;;  %v1181_v16 = vld [vmem:[%s1806_s5 + $0x10] ss:$0 sm:$0xff] (!%p458_p4)  ;;  %vm508_vm1 = vcmask (!%p458_p4), 261120  }
  0x2d   : > { %s1282_s26 = smul.u32 120, %s1867_s30  ;;  %v466_v5 = vmax.f32 (!%p458_p4), %v464_v3, 0.0  ;;  %v467_v6 = vmax.f32 (!%p458_p4), %v465_v4, 0.0  ;;  %v502_v15 = vpack.c.bf16 (!%p458_p4), %v500_v14, %v499_v13  ;;  %1228 = vmatprep.mubr.msk.bf16.mxu0 (!%p458_p4), %vm1500_vm0, %v1499_v12  ;;  %v1182_v19 = vld [vmem:[%s1806_s5 + $0x18] ss:$0 sm:$0xff] (!%p458_p4) }
  0x2e   : > { %1225 = vmatpush3.bf16.msra.mxu0 (!%p458_p4), %v501_v11  ;;  %v1183_v27 = vld [vmem:[%s1806_s5 + $0x40] ss:$0 sm:$0xff] (!%p458_p4) }
  0x2f   : > { %s1672_s7 = scalar_lea.vmem %s1807_s6, %s1282_s26  ;;  %v468_v7 = vmin.f32 (!%p458_p4), %v466_v5, 1.0  ;;  %v469_v8 = vmin.f32 (!%p458_p4), %v467_v6, 1.0  ;;  %1226 = vmatprep.subr.bf16.mxu0 (!%p458_p4), %v1499_v12 }
  0x31   : > { %473 = vperm.xlu0 (!%p458_p4), %1382, %v468_v7  }
  0x32   : > { %1227 = vmatpush3.bf16.msra.mxu0 %v502_v15 }
  0x35   : > { %478 = vperm.xlu0 %1382, %v469_v8  }
  0xb0   : > { %v474_v17 = vpop.permute.xlu0 %473 }
  0xb1   : > { %v485_v18 = vmul.f32 %v1181_v16, %v474_v17 }
  0xb3   : > { %v492_v21 = vadd.f32 %v1182_v19, %v485_v18 }
  0xb4   : > { %v479_v20 = vpop.permute.xlu0 %478 }
  0xb5   : > { %v486_v22 = vmul.f32 %v1181_v16, %v479_v20  ;;  %v494_v24 = vmax.f32 %v492_v21, 0.0 }
  0xb7   : > { %v493_v23 = vadd.f32 %v1182_v19, %v486_v22 }
  0xb9   : > { %v495_v25 = vmax.f32 %v493_v23, 0.0 }
  0xbb   : > { %v496_v26 = vpack.c.bf16 %v495_v25, %v494_v24 }
  0xbd   : > { %1229 = vmatmul.mubr.msk.bf16.vlgmr.msra.gmra.mrb[0].mxu0 %vm508_vm1, %v496_v26 }
 0x190   : > { %v546_v28 = vpop.f32.mrb[0].mxu0 }
 0x191   : > { %v547_v29 = vadd.f32 %v1183_v27, %v546_v28  ;;  %v1230_v30 = vpop.f32.mrb[1].mxu0 }
 0x192   : > { %v549_v31 = vpop.f32.mrb[2].mxu0 }
 0x193   : > { %553 = vst.msk [vmem:[#allocation2] sm:$0xff] %vm508_vm1, %v547_v29  ;;  %v550_v32 = vadd.f32 %v1183_v27, %v549_v31  ;;  %v1231_v33 = vpop.f32.mrb[3].mxu0 }
 0x195   : > { %554 = vst.msk [vmem:[#allocation2 + $0x8] sm:$0xff] %vm508_vm1, %v550_v32 }
 0x196 PF: > { %p1185_p5 = scmp.ne.s32.totalorder %s1472_s27, 0 }
 0x197   : > { %vm558_vm2 = vcmask (!%p1185_p5), 261120   ;;  %v1501_v36 = vmov (!%p1185_p5), 0.0  }
 0x198   : > { %557 = sbr.rel (%p1185_p5) target bundleno = 416 (0x1a0), region = 56  ;;  %559 = vst.msk [vmem:[#allocation3] sm:$0xff] (!%p1185_p5), %vm558_vm2, %v1501_v36  ;;  %560 = vst.msk [vmem:[#allocation3 + $0x8] sm:$0xff] (!%p1185_p5), %vm558_vm2, %v1501_v36 }
 0x19a   : > { %v561_v34 = vld [vmem:[#allocation2] sm:$0xff] (!%p1185_p5) }
 0x19c   : > { %v562_v35 = vld [vmem:[#allocation2 + $0x8] sm:$0xff] (!%p1185_p5) }
 0x19d   : > { %v563_v37 = vpack.c.bf16 (!%p1185_p5), %v562_v35, %v561_v34 }
 0x19f   : > { %564 = vst.msk [vmem:[#allocation4] sm:$0xff] %vm558_vm2, %v563_v37 }
 0x1a0 PF: > { %v565_v38 = vld [vmem:[%s1648_s20] sm:$0xff]  ;;  %v1502_v39 = vmov 0   ;;  %v566_v40 = vld [vmem:[%s1648_s20 + $0x8] sm:$0xff]  ;;  %v1503_v44 = vmov 0.0   ;;  %v596_v45 = vld [vmem:[%s1672_s7 + $0x10] sm:$0xff]  ;;  %vm1504_vm3 = vmmov 0  }
 0x1a1   : > { %1383 = vset.pattern.permute.xlu0 %v1502_v39  ;;  %v594_v41 = vld [vmem:[%s1672_s7] sm:$0xff]  ;;  %v595_v42 = vld [vmem:[%s1672_s7 + $0x8] sm:$0xff]  ;;  %1232 = vmatprep.subr.bf16.mxu0 %v1503_v44  ;;  %v597_v46 = vld [vmem:[%s1672_s7 + $0x18] sm:$0xff]  ;;  %vm658_vm4 = vcmask 130048   ;;  %vm605_vm5 = vcmask 261120   ;;  %p780_p7 = scmp.eq.s32.totalorder %s1472_s27, 1 }
 0x1a2   : > { %570 = vperm.xlu0 %1383, %v565_v38   ;;  %v598_v43 = vpack.c.bf16 %v595_v42, %v594_v41  ;;  %1240 = vmatprep.subr.bf16.mxu1 %v1503_v44  ;;  %v599_v48 = vpack.c.bf16 %v597_v46, %v596_v45  ;;  %v1384_v49 = vld [vmem:[%s1653_s24] sm:$0xff]   ;;  %v1187_v54 = vld [vmem:[%s1806_s5 + $0x8] ss:$0 sm:$0xff]  ;;  %v705_v15 = vld [vmem:[#allocation3] sm:$0xff]  ;;  %p1194_p9 = scmp.ne.s32.totalorder %s1472_s27, 1 }
 0x1a3   : > { %1242 = vmatprep.mubr.msk.bf16.mxu1 %vm1504_vm3, %v1503_v44  ;;  %1236 = vmatprep.mubr.msk.bf16.mxu0 %vm1504_vm3, %v1503_v44  ;;  %v1385_v50 = vld [vmem:[%s1658_s16] sm:$0xff]   ;;  %v706_v17 = vld [vmem:[#allocation3 + $0x8] sm:$0xff]  ;;  %v791_v23 = vld [vmem:[%s1672_s7 + $0x28] sm:$0xff] (!%p1194_p9)  ;;  %v1505_v26 = vmov (!%p1194_p9), 0.0   ;;  %vm1506_vm6 = vmmov (!%p1194_p9), 0  }
 0x1a4   : > { %1233 = vmatpush3.bf16.msra.mxu0 %v598_v43  ;;  %716 = vxpose.xlu1.c.b16.start.end [1/1] (short) (narrow) %v1385_v50, 16  ;;  %v1186_v51 = vld [vmem:[%s1806_s5] ss:$0 sm:$0xff]  ;;  %v792_v24 = vld [vmem:[%s1672_s7 + $0x30] sm:$0xff] (!%p1194_p9)  ;;  %v793_v25 = vld [vmem:[%s1672_s7 + $0x38] sm:$0xff] (!%p1194_p9) }
 0x1a5   : > { %1234 = vmatprep.subr.bf16.mxu0 %v1503_v44  ;;  %v1188_v2 = vld [vmem:[%s1672_s7 + $0x20] ss:$0 sm:$0xff]  ;;  %v795_v27 = vpack.c.bf16 (!%p1194_p9), %v792_v24, %v791_v23  ;;  %v787_v32 = vld [vmem:[#allocation2 + $0x8] sm:$0xff] (!%p1194_p9)  ;;  %v849_v37 = vld [vmem:[%s1672_s7 + $0x50] sm:$0xff] (!%p1194_p9) }
 0x1a6   : > { %575 = vperm.xlu0 %1383, %v566_v40   ;;  %v652_v47 = vld [vmem:[#allocation4] sm:$0xff]  ;;  %v850_v38 = vld [vmem:[%s1672_s7 + $0x58] sm:$0xff] (!%p1194_p9)  ;;  %v852_v41 = vld [vmem:[%s1672_s7 + $0x68] sm:$0xff] (!%p1194_p9) }
 0x1a7   : > { %1241 = vmatpush3.bf16.msra.mxu1 %v652_v47  ;;  %v794_v28 = vld [vmem:[%s1672_s7 + $0x40] sm:$0xff] (!%p1194_p9)  ;;  %v853_v39 = vpack.c.bf16 (!%p1194_p9), %v850_v38, %v849_v37  ;;  %v1195_v43 = vld [vmem:[%s1672_s7 + $0x48] ss:$0 sm:$0xff] (!%p1194_p9) }
 0x1a8   : > { %1235 = vmatpush3.bf16.msra.mxu0 %v599_v48  ;;  %1246 = vmatprep.subr.bf16.mxu1 %v1503_v44  ;;  %v786_v31 = vld [vmem:[#allocation2] sm:$0xff] (!%p1194_p9)  ;;  %v796_v33 = vpack.c.bf16 (!%p1194_p9), %v794_v28, %v793_v25 }
 0x1a9   : > { %1252 = vmatprep.subr.bf16.mxu0 (!%p1194_p9), %v1505_v26  ;;  %v851_v40 = vld [vmem:[%s1672_s7 + $0x60] sm:$0xff] (!%p1194_p9) }
 0x1aa   : > { %1243 = vmatmul.mubr.msk.bf16.vlgmr.msra.gmra.mrb[0].mxu1 %vm658_vm4, %v1384_v49  ;;  %v854_v42 = vpack.c.bf16 (!%p1194_p9), %v852_v41, %v851_v40 }
 0x1ab   : > { %1248 = vmatprep.mubr.msk.bf16.mxu1 %vm1504_vm3, %v1503_v44 }
 0x20a   : > { %v724_v14 = vpop.trf.xlu1 }
 0x221   : > { %v571_v52 = vpop.permute.xlu0 %570 }
 0x222   : > { %v582_v53 = vmul.f32 %v1186_v51, %v571_v52 }
 0x224   : > { %v589_v56 = vadd.f32 %v1187_v54, %v582_v53  ;;  %v1197_v53 = vld [vmem:[%s1672_s7 + $0x70] ss:$0 sm:$0xff] (!%p1194_p9) }
 0x225   : > { %v576_v55 = vpop.permute.xlu0 %575 }
 0x226   : > { %v583_v57 = vmul.f32 %v1186_v51, %v576_v55  ;;  %v591_v59 = vmax.f32 %v589_v56, 0.0 }
 0x228   : > { %v590_v58 = vadd.f32 %v1187_v54, %v583_v57 }
 0x22a   : > { %v592_v60 = vmax.f32 %v590_v58, 0.0 }
 0x22c   : > { %v593_v61 = vpack.c.bf16 %v592_v60, %v591_v59 }
 0x22e   : > { %1237 = vmatmul.mubr.msk.bf16.vlgmr.msra.gmra.mrb[0].mxu0 %vm605_vm5, %v593_v61 }
 0x22f   : > { %1256 = vmatprep.mubr.msk.bf16.mxu0 (!%p1194_p9), %vm1506_vm6, %v1505_v26  ;;  %1253 = vmatpush3.bf16.msra.mxu0 (!%p1194_p9), %v795_v27 }
 0x230   : > { %1254 = vmatprep.subr.bf16.mxu0 (!%p1194_p9), %v1505_v26 }
 0x233   : > { %1255 = vmatpush3.bf16.msra.mxu0 (!%p1194_p9), %v796_v33 }
 0x27d   : > { %v696_v62 = vpop.f32.mrb[0].mxu1 }
 0x27e   : > { %v1244_v63 = vpop.f32.mrb[1].mxu1 }
 0x27f   : > { %v699_v0 = vpop.f32.mrb[2].mxu1 }
 0x280   : > { %v1245_v1 = vpop.f32.mrb[3].mxu1 }
 0x301   : > { %v643_v3 = vpop.f32.mrb[0].mxu0 }
 0x302   : > { %v644_v4 = vadd.f32 %v1188_v2, %v643_v3  ;;  %v1238_v5 = vpop.f32.mrb[1].mxu0 }
 0x303   : > { %v646_v6 = vpop.f32.mrb[2].mxu0 }
 0x304   : > { %v697_v7 = vadd.f32 %v696_v62, %v644_v4  ;;  %v647_v8 = vadd.f32 %v1188_v2, %v646_v6  ;;  %v1239_v9 = vpop.f32.mrb[3].mxu0 }
 0x306   : > { %v700_v10 = vadd.f32 %v699_v0, %v647_v8  ;;  %v703_v11 = vmax.f32 %v697_v7, 0.0 }
 0x308   : > { %v704_v12 = vmax.f32 %v700_v10, 0.0 }
 0x30a   : > { %v709_v13 = vpack.c.bf16 %v704_v12, %v703_v11 }
 0x30c   : > { %1247 = vmatpush3.bf16.msra.mxu1 %v709_v13 }
 0x30d   : > { %1260 = vmatprep.subr.bf16.mxu1 (!%p1194_p9), %v1505_v26 }
 0x30f   : > { %1249 = vmatmul.mubr.msk.bf16.vlgmr.msra.gmra.mrb[4].mxu1 %vm658_vm4, %v724_v14 }
 0x310   : > { %1264 = vmatprep.mubr.msk.bf16.mxu1 (!%p1194_p9), %vm1506_vm6, %v1505_v26  ;;  %1261 = vmatpush3.bf16.msra.mxu1 (!%p1194_p9), %v853_v39 }
 0x311   : > { %1262 = vmatprep.subr.bf16.mxu1 (!%p1194_p9), %v1505_v26 }
 0x314   : > { %1263 = vmatpush3.bf16.msra.mxu1 (!%p1194_p9), %v854_v42 }
 0x3e1   : > { %783 = sbr.rel (%p1194_p9) target bundleno = 1450 (0x5aa), region = 60 }
 0x3e2   : > { %v769_v16 = vpop.f32.mrb[4].mxu1 }
 0x3e3   : > { %v776_v18 = vadd.f32 %v769_v16, %v705_v15  ;;  %v1250_v19 = vpop.f32.mrb[5].mxu1 }
 0x3e4   : > { %v772_v20 = vpop.f32.mrb[6].mxu1 }
 0x3e5   : > { %778 = vst.msk [vmem:[#allocation3] sm:$0xff] %vm605_vm5, %v776_v18  ;;  %v777_v21 = vadd.f32 %v772_v20, %v706_v17  ;;  %v1251_v22 = vpop.f32.mrb[7].mxu1 }
 0x3e7   : > { %779 = vst.msk [vmem:[#allocation3 + $0x8] sm:$0xff] %vm605_vm5, %v777_v21 }
 0x3ec   : > { %v784_v29 = vld [vmem:[#allocation3] sm:$0xff] }
 0x3ed   : > { %v788_v34 = vadd.f32 %v786_v31, %v784_v29 }
 0x3ee   : > { %v785_v30 = vld [vmem:[#allocation3 + $0x8] sm:$0xff] }
 0x3ef   : > { %v789_v35 = vadd.f32 %v787_v32, %v785_v30 }
 0x3f1   : > { %v790_v36 = vpack.c.bf16 %v789_v35, %v788_v34 }
 0x3f3   : > { %1257 = vmatmul.mubr.msk.bf16.vlgmr.msra.gmra.mrb[0].mxu0 %vm605_vm5, %v790_v36 }
 0x4c6   : > { %v839_v44 = vpop.f32.mrb[0].mxu0 }
 0x4c7   : > { %v840_v45 = vadd.f32 %v1195_v43, %v839_v44  ;;  %v1258_v46 = vpop.f32.mrb[1].mxu0 }
 0x4c8   : > { %v842_v47 = vpop.f32.mrb[2].mxu0 }
 0x4c9   : > { %v843_v48 = vadd.f32 %v1195_v43, %v842_v47  ;;  %v1259_v49 = vpop.f32.mrb[3].mxu0  ;;  %v846_v50 = vmax.f32 %v840_v45, 0.0 }
 0x4cb   : > { %v847_v51 = vmax.f32 %v843_v48, 0.0 }
 0x4cd   : > { %v848_v52 = vpack.c.bf16 %v847_v51, %v846_v50 }
 0x4cf   : > { %1265 = vmatmul.mubr.msk.bf16.vlgmr.msra.gmra.mrb[0].mxu1 %vm605_vm5, %v848_v52 }
 0x5a2   : > { %v897_v54 = vpop.f32.mrb[0].mxu1 }
 0x5a3   : > { %v898_v55 = vadd.f32 %v1197_v53, %v897_v54  ;;  %v1266_v56 = vpop.f32.mrb[1].mxu1 }
 0x5a4   : > { %v900_v57 = vpop.f32.mrb[2].mxu1 }
 0x5a5   : > { %v904_v58 = vmax.f32 %v898_v55, 0.0  ;;  %v901_v59 = vadd.f32 %v1197_v53, %v900_v57  ;;  %v1267_v60 = vpop.f32.mrb[3].mxu1 }
 0x5a7   : > { %906 = vst.msk [vmem:[#allocation2] sm:$0xff] %vm605_vm5, %v904_v58  ;;  %v905_v61 = vmax.f32 %v901_v59, 0.0 }
 0x5a9   : > { %907 = vst.msk [vmem:[#allocation2 + $0x8] sm:$0xff] %vm605_vm5, %v905_v61 }
 0x5aa PF: > { %p908_p10 = scmp.eq.s32.totalorder %s1476_s28, 1 }
 0x5ac   : > { %p909_p11 = pnand %p908_p10, %p780_p7 }
 0x5ad   : > { %v1507_v0 = vmov (!%p909_p11), 0.0|0.0   ;;  %vm1508_vm7 = vmmov (!%p909_p11), 0   ;;  %v1509_v2 = vmov (!%p909_p11), 0.0   ;;  %v913_v3 = vld [vmem:[%s1663_s13] sm:$0x3] (!%p909_p11)  ;;  %vm989_vm8 = vcmask (!%p909_p11), 254976  }
 0x5ae   : > { %912 = sbr.rel (%p909_p11) target bundleno = 1675 (0x68b), region = 64  ;;  %v914_v62 = vld [vmem:[#allocation2] sm:$0xff] (!%p909_p11)  ;;  %1275 = vmatprep.subr.bf16.mxu0 (!%p909_p11), %v1507_v0  ;;  %1272 = vmatprep.mubr.msk.f32.mxu0 (!%p909_p11), %vm1508_vm7, %v1509_v2 }
 0x5b0   : > { %v915_v63 = vld [vmem:[#allocation2 + $0x8] sm:$0xff] (!%p909_p11) }
 0x5b1   : > { %v1276_v1 = vpack.c.bf16 (!%p909_p11), %v915_v63, %v914_v62 }
 0x5b3   : > { %1277 = vmatpush3.bf16.msra.mxu0 (!%p909_p11), %v1276_v1 }
 0x5b6   : > { %1273 = vmatmul.mubr.msk.f32.vlgmr.msra.gmra.mrb[0].mxu0 %vm658_vm4, %v913_v3 }
 0x689   : > { %v985_v4 = vpop.f32.mrb[0].mxu0 }
 0x68a   : > { %990 = vst.msk [vmem:[%s406_s8] sm:$0x3] %vm989_vm8, %v985_v4  ;;  %v1274_v5 = vpop.f32.mrb[1].mxu0 }
 0x68b PF: > { %s1201_s27 = sshll.u32 %s1480_s29, 5  ;;  %s1838_s7 = sld [smem:[#allocation20_spill]] }
 0x68c   : > { %s1005_s13 = sshll.u32 %s406_s8, 4  ;;  %s1839_s15 = sand.u32 1, %s1464_s25   ;;  %s1006_s13 = int_to_ptr.vmem [resolvable:$true] %s1005_s13 }
 0x68d   : > { %s992_s23 = scalar_lea.sflag [#allocation6], %s1839_s15  ;;  %s1386_s12 = scalar_lea.vmem %s1006_s13, 32 }
 0x68e   : > { %p1387_p12 = scmp.ne.s32.totalorder %s1006_s13, %s1386_s12  ;;  %s1510_s18 = smov [#allocation5]  }
 0x68f   : > { %s1390_s30 = sshll.u32 %s1510_s18, 4  ;;  %s1391_s30 = int_to_ptr.vmem [resolvable:$false] %s1390_s30 }
 0x690   : > { %p1388_p13 = pnand %p1387_p12, %p1613_p6  ;;  %s1392_s26 = scalar_lea.vmem %s1391_s30, 64 }
 0x691   : > { %s1744_s14 = scalar_lea.hbm %s1838_s7, %s1201_s27  ;;  %p1393_p1 = scmp.lt.s32.totalorder %s1006_s13, %s1391_s30 }
 0x692   : > { %p1389_p0 = pneg %p1388_p13  ;;  %p1394_p2 = scmp.lt.s32.totalorder %s1392_s26, %s1386_s12 }
 0x694   : > { %p1395_p3 = por %p1394_p2, %p1393_p1 }
 0x696   : > { %p1396_p4 = pnand %p1395_p3, %p1389_p0 }
 0x698   : > { %1399 = shalt.err (!%p1396_p4)
}
 0x699   : > { %s1400_s29 = scalar_lea.hbm %s1744_s14, 32  ;;  %s1404_s9 = scalar_lea.hbm %s1838_s7, 64 }
 0x69a   : > { %p1401_p5 = scmp.ne.s32.totalorder %s1744_s14, %s1400_s29  ;;  %p1405_p10 = scmp.lt.u32.totalorder %s1744_s14, %s1838_s7 }
 0x69b   : > { %p1406_p11 = scmp.lt.u32.totalorder %s1404_s9, %s1400_s29  ;;  %p1408_p13 = scmp.lt.u32.totalorder %s1400_s29, %s1744_s14 }
 0x69c   : > { %p1402_p7 = pnand %p1401_p5, %p1613_p6 }
 0x69d   : > { %p1407_p12 = por %p1406_p11, %p1405_p10 }
 0x69e   : > { %p1403_p9 = pneg %p1402_p7 }
 0x69f   : > { %p1409_p0 = por %p1408_p13, %p1407_p12 }
 0x6a1   : > { %p1410_p1 = pnand %p1409_p0, %p1403_p9 }
 0x6a3   : > { %1413 = shalt.err (!%p1410_p1)
}
 0x6a4   : > { %1283 = dma.vmem_to_hbm [thread:$0]  (%p1613_p6), %s1006_s13, 32, %s1744_s14, %s992_s23  }
 0x6a5 PF: > { %s1840_s20 = sld [smem:[#allocation13_spill]]  ;;  %s1841_s21 = sld [smem:[#allocation8_spill]] }
 0x6ab   : > { %p1289_p2 = scmp.ge.s32.totalorder %s1840_s20, 2  ;;  %s1017_s19 = sand.u32 1, %s1841_s21  }
 0x6ac   : > { %s1018_s27 = scalar_lea.sflag [#allocation6], %s1017_s19 }
 0x6ad   : > { %p1286_p3 = pnand %p1289_p2, %p1621_p8 }
 0x6af   : > { %1455 = dma.done.wait (!%p1286_p3), %s1018_s27, 32  }
 0x6b0   : > { %1457 = vsyncadd (!%p1286_p3), %s1018_s27, 4294967264  ;;  %s20_s10 = sadd.s32 1, %s1840_s20   ;;  %s1843_s28 = sld [smem:[#allocation9_spill]] }
 0x6b1   : > { %p17_p4 = scmp.ge.s32.totalorder %s20_s10, 10   ;;  %s1844_s26 = sld [smem:[#allocation19_spill]] }
 0x6b2   : > { %s1845_s27 = sld [smem:[#allocation10_spill]]  ;;  %s1846_s16 = sld [smem:[#allocation11_spill]] }
 0x6b3   : > { %s1847_s29 = sld [smem:[#allocation12_spill]]  ;;  %s1848_s30 = sld [smem:[#allocation14_spill]] }
 0x6b4   : > { %s1849_s8 = sld [smem:[#allocation16_spill]]  ;;  %s1850_s9 = sld [smem:[#allocation18_spill]] }
 0x6b5   : > { %s1851_s24 = smov %s1464_s25  ;;  %19 = sbr.rel (!%p17_p4) target bundleno = 8 (0x8), region = 114 }
 0x6b6   : > { %s1852_s25 = smov %s1843_s28 }
 0x6b8   : > { %s1853_s28 = smov %s1846_s16 }
 0x6bc   :  { %1023 = vsyncpa [#allocation6], 1 }
 0x6bd   :  { %1025 = vsyncpa [#allocation6 + $0x1], 1 }

</bundles_post_ra>
